<compile_context>
chip_gen: v6e
topology: v6e:2x2x1
jax: 0.10.0
libtpu: 0.0.40
codegen_flags: <defaults>
</compile_context>

<pallas_src>
import jax
import jax.numpy as jnp
from jax.experimental import pallas as pl
from jax.experimental.pallas import tpu as pltpu


_MiB = 1024 * 1024
# Conservative live-VMEM target, safe w.r.t. the scoped-VMEM defaults on
# v5e (16 MiB), v6e (32 MiB) and v7x (32 MiB scoped / 64 MiB physical).
_VMEM_BUDGET_BYTES = 12 * _MiB
# Below this many MACs, the XLA-fused GEMM+bias+act beats pallas_call fixed cost.
_SMALL_PROBLEM_MACS = 1 << 20


def _round_up(x: int, m: int) -> int:
    return ((x + m - 1) // m) * m


def _sublane_pack(dtype) -> int:
    # Native sublane packing: 8 rows for 4-byte, 16 for 2-byte, 32 for 1-byte.
    return {4: 8, 2: 16, 1: 32}.get(jnp.dtype(dtype).itemsize, 8)


# --------------------------------------------------------------------------
# Kernels
# --------------------------------------------------------------------------
def _make_resident_kernel(act, precision):
    """y = act(x @ w^T + b); weight/bias VMEM-resident, 1-D grid over rows."""
    def kernel(x_ref, w_ref, b_ref, o_ref):
        # x_ref: (tm, IN), w_ref: (OUT, IN), b_ref: (1, OUT)
        y = jax.lax.dot_general(
            x_ref[...], w_ref[...],
            dimension_numbers=(((1,), (1,)), ((), ())),   # contract IN of both
            preferred_element_type=jnp.float32,
            precision=precision)
        y = y + b_ref[...].astype(jnp.float32)
        o_ref[...] = act(y).astype(o_ref.dtype)
    return kernel


def _make_tiled_kernel(act, precision):
    """General (rows, OUT, IN) tiled kernel with an f32 accumulator (K last)."""
    def kernel(x_ref, w_ref, b_ref, o_ref, acc_ref):
        k = pl.program_id(2)

        @pl.when(k == 0)
        def _():
            acc_ref[...] = jnp.zeros_like(acc_ref)

        acc_ref[...] += jax.lax.dot_general(
            x_ref[...], w_ref[...],
            dimension_numbers=(((1,), (1,)), ((), ())),
            preferred_element_type=jnp.float32,
            precision=precision)

        @pl.when(k == pl.num_programs(2) - 1)
        def _():
            y = acc_ref[...] + b_ref[...].astype(jnp.float32)
            o_ref[...] = act(y).astype(o_ref.dtype)
    return kernel


# --------------------------------------------------------------------------
# pallas_call wrappers
# --------------------------------------------------------------------------
def _resident_linear(x2d, weight, bias2d, out_dtype, tm, act, precision):
    rows, in_size = x2d.shape
    out_size = weight.shape[0]
    grid = (pl.cdiv(rows, tm),)

    return pl.pallas_call(
        _make_resident_kernel(act, precision),
        out_shape=jax.ShapeDtypeStruct((rows, out_size), out_dtype),
        grid_spec=pltpu.PrefetchScalarGridSpec(
            num_scalar_prefetch=0,
            grid=grid,
            in_specs=[
                # Streamed activations: one row tile per grid step.
                pl.BlockSpec((tm, in_size), lambda i: (i, 0)),
                # Weight (OUT, IN) and bias: constant block index -> fetched
                # once, resident in VMEM for the whole row sweep.
                pl.BlockSpec((out_size, in_size), lambda i: (0, 0)),
                pl.BlockSpec((1, out_size), lambda i: (0, 0)),
            ],
            out_specs=pl.BlockSpec((tm, out_size), lambda i: (i, 0)),
        ),
        compiler_params=pltpu.CompilerParams(
            dimension_semantics=("parallel",)),
    )(x2d, weight, bias2d)


def _tiled_linear(x2d, weight, bias2d, out_dtype, act, precision):
    rows, in_size = x2d.shape
    out_size = weight.shape[0]

    # Contraction (IN) axis must be zero-padded up to the tile — garbage on
    # the K axis would corrupt every output.  Lane-align to 128 first.
    in_p = _round_up(in_size, 128)
    tk = 512 if in_p % 512 == 0 else (256 if in_p % 256 == 0 else 128)
    if in_p != in_size:
        x2d = jnp.pad(x2d, ((0, 0), (0, in_p - in_size)))
        weight = jnp.pad(weight, ((0, 0), (0, in_p - in_size)))

    # Rows / OUT are NOT padded: partial edge blocks only produce garbage in
    # rows/cols that the masked output store never writes back.
    tm = rows if rows <= 256 else 256          # 256 is a multiple of 8/16/32
    tn = out_size if out_size <= 512 else 512  # 512 is a multiple of 128

    grid = (pl.cdiv(rows, tm), pl.cdiv(out_size, tn), in_p // tk)

    return pl.pallas_call(
        _make_tiled_kernel(act, precision),
        out_shape=jax.ShapeDtypeStruct((rows, out_size), out_dtype),
        grid_spec=pltpu.PrefetchScalarGridSpec(
            num_scalar_prefetch=0,
            grid=grid,
            in_specs=[
                pl.BlockSpec((tm, tk), lambda i, j, k: (i, k)),   # x tile
                pl.BlockSpec((tn, tk), lambda i, j, k: (j, k)),   # weight (OUT, IN)
                pl.BlockSpec((1, tn), lambda i, j, k: (0, j)),    # bias tile
            ],
            out_specs=pl.BlockSpec((tm, tn), lambda i, j, k: (i, j)),
            scratch_shapes=[pltpu.VMEM((tm, tn), jnp.float32)],
        ),
        compiler_params=pltpu.CompilerParams(
            dimension_semantics=("parallel", "parallel", "arbitrary")),
    )(x2d, weight, bias2d)


# --------------------------------------------------------------------------
# Public forward
# --------------------------------------------------------------------------
def feature_extractor_forward(inputs: jax.Array,
                              weight: jax.Array,
                              bias: jax.Array,
                              output_size: int,
                              *,
                              activation=jax.nn.relu,
                              precision=None,
                              force_pallas: bool = False,
                              max_resident_weight_bytes: int = 6 * _MiB) -> jax.Array:
    """JAX/Pallas equivalent of FeatureExtractor(in, out, activation)(inputs).

    weight : (OUT, IN) -- PyTorch nn.Linear layout, consumed un-transposed.
    bias   : (OUT,)
    inputs : (*, IN) -> (*, OUT)

    Pass precision=jax.lax.Precision.HIGHEST for strict f32 parity with
    PyTorch's f32 nn.Linear at large IN (default MXU precision is reduced).
    """
    if output_size == 0:
        # ptu.zeros(0) branch — no kernel launch at all.
        return jnp.zeros((0,), dtype=inputs.dtype)

    orig_lead = inputs.shape[:-1]
    in_size = inputs.shape[-1]
    rows = 1
    for d in orig_lead:
        rows *= d
    out_dtype = jnp.result_type(inputs.dtype, weight.dtype)

    if rows == 0:
        return jnp.zeros(orig_lead + (output_size,), dtype=out_dtype)

    # Small-problem bypass: whole op is a single MXU tile; XLA fuses the
    # GEMM + bias + activation into one op and wins over pallas_call overhead.
    if not force_pallas and rows * in_size * output_size < _SMALL_PROBLEM_MACS:
        y = jnp.einsum("...i,oi->...o", inputs, weight, precision=precision)
        return activation(y + bias).astype(out_dtype)

    x2d = inputs.reshape(rows, in_size)
    bias2d = bias.reshape(1, output_size)

    pack = _sublane_pack(x2d.dtype)
    # VMEM cost of keeping the weight/bias resident (budget 2x buffering).
    w_cost = 2 * (weight.size * weight.dtype.itemsize
                  + bias.size * bias.dtype.itemsize)
    # VMEM cost per output row: double-buffered x + out tiles + f32 matmul result.
    row_bytes = (2 * in_size * x2d.dtype.itemsize
                 + 2 * output_size * jnp.dtype(out_dtype).itemsize
                 + 4 * output_size)
    act_budget = _VMEM_BUDGET_BYTES - w_cost
    resident_ok = (w_cost <= max_resident_weight_bytes
                   and act_budget >= pack * row_bytes)

    if resident_ok:
        cap = max(pack, min(512, act_budget // row_bytes))
        cap = max(pack, (cap // pack) * pack)      # dtype-aware sublane pack
        tm = rows if rows <= cap else cap          # full-dim block when small
        out2d = _resident_linear(x2d, weight, bias2d, out_dtype, tm,
                                 activation, precision)
    else:
        out2d = _tiled_linear(x2d, weight, bias2d, out_dtype,
                              activation, precision)

    return out2d.reshape(orig_lead + (output_size,))


# --------------------------------------------------------------------------
# Demo / self-test
# --------------------------------------------------------------------------
if __name__ == "__main__":
    key = jax.random.PRNGKey(0)
    k_x, k_w, k_b = jax.random.split(key, 3)

    # Encoder-style input (N=seq_len, B=batch, IN), as in the module docstring.
    seq, batch, input_size, output_size = 8, 2, 32, 32
    x = jax.random.normal(k_x, (seq, batch, input_size), dtype=jnp.float32)
    weight = 0.1 * jax.random.normal(k_w, (output_size, input_size),
                                     dtype=jnp.float32)   # torch layout (OUT, IN)
    bias = 0.1 * jax.random.normal(k_b, (output_size,), dtype=jnp.float32)

    # Reference: relu(x @ W^T + b) on the last dim.
    ref = jax.nn.relu(jnp.einsum("sbi,oi->sbo", x, weight) + bias)

    # 1) Main Pallas path (weight-resident streaming kernel).
    out = feature_extractor_forward(x, weight, bias, output_size,
                                    force_pallas=True)
    out = jax.block_until_ready(out)
    assert out.shape == ref.shape and out.dtype == ref.dtype
    assert bool(jnp.allclose(out, ref, atol=1e-5, rtol=1e-5))

    # 2) Tiled fallback path (forced by disallowing a resident weight).
    out_tiled = feature_extractor_forward(x, weight, bias, output_size,
                                          force_pallas=True,
                                          max_resident_weight_bytes=0)
    out_tiled = jax.block_until_ready(out_tiled)
    assert bool(jnp.allclose(out_tiled, ref, atol=1e-5, rtol=1e-5))

    # 3) Default dispatch: small-problem XLA bypass must agree.
    out_bypass = jax.block_until_ready(
        feature_extractor_forward(x, weight, bias, output_size))
    assert bool(jnp.allclose(out_bypass, ref, atol=1e-5, rtol=1e-5))

    # 4) Degenerate branch: output_size == 0 -> zeros(0), no kernel launch.
    z = feature_extractor_forward(x,
                                  jnp.zeros((0, input_size), jnp.float32),
                                  jnp.zeros((0,), jnp.float32),
                                  output_size=0)
    z = jax.block_until_ready(z)
    assert z.shape == (0,)

    print("KERNEL_OK")
</pallas_src>

<mosaic_0001>
module attributes {stable_mosaic.version = 11 : i64} {
  func.func @kernel(%arg0: i32, %arg1: memref<16x32xf32, #tpu.memory_space<vmem>>, %arg2: memref<32x32xf32, #tpu.memory_space<vmem>>, %arg3: memref<1x32xf32, #tpu.memory_space<vmem>>, %arg4: memref<16x32xf32, #tpu.memory_space<vmem>>) attributes {dimension_semantics = [#tpu.dimension_semantics<parallel>], iteration_bounds = array<i64: 1>, scalar_prefetch = 0 : i64, scratch_operands = 0 : i64, tpu.core_type = #tpu.core_type<tc>, window_params = [{transform_indices = @transform_0, window_bounds = array<i64: 16, 32>}, {pipeline_mode = #tpu.pipeline_mode<synchronous>, transform_indices = @transform_1, window_bounds = array<i64: 32, 32>}, {pipeline_mode = #tpu.pipeline_mode<synchronous>, transform_indices = @transform_2, window_bounds = array<i64: 1, 32>}, {transform_indices = @transform_3, window_bounds = array<i64: 16, 32>}]} {
    %c0 = arith.constant 0 : index
    %c0_0 = arith.constant 0 : index
    %0 = vector.load %arg1[%c0, %c0_0] : memref<16x32xf32, #tpu.memory_space<vmem>>, vector<16x32xf32>
    %c0_1 = arith.constant 0 : index
    %c0_2 = arith.constant 0 : index
    %1 = vector.load %arg2[%c0_1, %c0_2] : memref<32x32xf32, #tpu.memory_space<vmem>>, vector<32x32xf32>
    %cst = arith.constant dense<0.000000e+00> : vector<16x32xf32>
    %2 = tpu.matmul %0, %1, %cst {dimension_numbers = #tpu.dot_dimension_numbers<[1], [1], [0], [0], [0, 0, 1, 0], [], []>} : vector<16x32xf32>, vector<32x32xf32>, vector<16x32xf32> -> vector<16x32xf32>
    %c0_3 = arith.constant 0 : index
    %c0_4 = arith.constant 0 : index
    %3 = vector.load %arg3[%c0_3, %c0_4] : memref<1x32xf32, #tpu.memory_space<vmem>>, vector<1x32xf32>
    %4 = vector.broadcast %3 : vector<1x32xf32> to vector<16x32xf32>
    %5 = arith.addf %2, %4 : vector<16x32xf32>
    %cst_5 = arith.constant 0.000000e+00 : f32
    %6 = vector.broadcast %cst_5 : f32 to vector<16x32xf32>
    %7 = arith.maximumf %5, %6 : vector<16x32xf32>
    %c0_6 = arith.constant 0 : index
    %c0_7 = arith.constant 0 : index
    %8 = vector.load %arg4[%c0_6, %c0_7] : memref<16x32xf32, #tpu.memory_space<vmem>>, vector<16x32xf32>
    tpu.vector_store %arg4[%c0_6, %c0_7], %7 {strides = array<i32>} : memref<16x32xf32, #tpu.memory_space<vmem>>, vector<16x32xf32>,
    return
  }
  func.func @transform_0(%arg0: i32) -> (i32, i32) {
    %c0_i32 = arith.constant 0 : i32
    %c0_i32_0 = arith.constant 0 : i32
    return %arg0, %c0_i32 : i32, i32
  }
  func.func @transform_1(%arg0: i32) -> (i32, i32) {
    %c0_i32 = arith.constant 0 : i32
    %c0_i32_0 = arith.constant 0 : i32
    %c0_i32_1 = arith.constant 0 : i32
    return %c0_i32, %c0_i32_0 : i32, i32
  }
  func.func @transform_2(%arg0: i32) -> (i32, i32) {
    %c0_i32 = arith.constant 0 : i32
    %c0_i32_0 = arith.constant 0 : i32
    %c0_i32_1 = arith.constant 0 : i32
    return %c0_i32, %c0_i32_0 : i32, i32
  }
  func.func @transform_3(%arg0: i32) -> (i32, i32) {
    %c0_i32 = arith.constant 0 : i32
    %c0_i32_0 = arith.constant 0 : i32
    return %arg0, %c0_i32 : i32, i32
  }
}

</mosaic_0001>

<bundles_post_ra>
// kernel: tpu_custom_call.1
= control target key start
LH: loop header
LB: loop body
LE: loop exit
PB: predicated region body
PF: predicated region fallthrough
CT: control target
= control target key end

     0   :  { %8 = vsyncpa [#allocation3], 0  ;;  %s325_s0 = inlined_call_operand.hbm [shape: f32[16,32], index: 0, kind: input, shape index: {}]   ;;  %s326_s1 = inlined_call_operand.hbm [shape: f32[32,32], index: 1, kind: input, shape index: {}]   ;;  %s327_s2 = inlined_call_operand.vmem [shape: f32[1,32], index: 2, kind: input, shape index: {}]   ;;  %s328_s3 = inlined_call_operand.hbm [shape: f32[16,32], index: 3, kind: output, shape index: {}]  }
   0x1   :  { %9 = vsyncpa [#allocation6], 0 }
   0x2   :  { %10 = vsyncpa [#allocation4], 0  ;;  %s267_s12 = smov [#allocation2]  }
   0x3   :  { %s16_s13 = sshll.u32 %s267_s12, 4  ;;  %s17_s13 = int_to_ptr.vmem [resolvable:$true] %s16_s13 }
   0x4   :  { %s209_s14 = scalar_lea.vmem %s17_s13, 256  ;;  %p214_p1 = scmp.lt.s32.totalorder %s17_s13, %s17_s13 }
   0x5   :  { %p210_p0 = scmp.ne.s32.totalorder %s17_s13, %s209_s14  ;;  %p215_p2 = scmp.lt.s32.totalorder %s209_s14, %s209_s14 }
   0x7   :  { %p216_p3 = por %p215_p2, %p214_p1 }
   0x9   :  { %p217_p4 = pnand %p216_p3, %p210_p0 }
   0xb   :  { %220 = shalt.err (!%p217_p4)
}
   0xc   :  { %s268_s15 = smov 128   ;;  %s269_s16 = smov 8  }
   0xd   :  { %22 = dma.hbm_to_vmem [thread:$0]  %s325_s0, 256, %s17_s13, [#allocation3], %s268_s15, %s268_s15, %s269_s16  }
   0xe   :  { %s270_s19 = smov [#allocation5]  }
   0xf   :  { %s28_s20 = sshll.u32 %s270_s19, 4  ;;  %s29_s20 = int_to_ptr.vmem [resolvable:$true] %s28_s20 }
  0x10   :  { %s229_s21 = scalar_lea.vmem %s29_s20, 512  ;;  %p234_p6 = scmp.lt.s32.totalorder %s29_s20, %s29_s20 }
  0x11   :  { %p230_p5 = scmp.ne.s32.totalorder %s29_s20, %s229_s21  ;;  %p235_p7 = scmp.lt.s32.totalorder %s229_s21, %s229_s21 }
  0x13   :  { %p236_p8 = por %p235_p7, %p234_p6 }
  0x15   :  { %p237_p9 = pnand %p236_p8, %p230_p5 }
  0x17   :  { %240 = shalt.err (!%p237_p9)
}
  0x18   :  { %34 = dma.hbm_to_vmem [thread:$0]  %s326_s1, 512, %s29_s20, [#allocation6], %s268_s15, %s268_s15, %s269_s16  }
  0x19   :  { %261 = dma.done.wait [#allocation3], 256  }
  0x1a   :  { %262 = vsyncadd [#allocation3], 4294967040 }
  0x1b   :  { %263 = dma.done.wait [#allocation6], 512  }
  0x1c   :  { %264 = vsyncadd [#allocation6], 4294966784  ;;  %vm56_vm0 = vcmask 261120   ;;  %v48_v0 = vld [vmem:[#allocation5 + $0x18] sm:$0xff]  ;;  %v47_v1 = vld [vmem:[#allocation5 + $0x10] sm:$0xff]  ;;  %s271_s24 = smov [#allocation7]  }
  0x1d   :  { %185 = vmatprep.subr.msk.mxu0 %vm56_vm0, %v48_v0  ;;  %v43_v2 = vld [vmem:[#allocation2] sm:$0xff]  ;;  %v46_v3 = vld [vmem:[#allocation5 + $0x8] sm:$0xff]  ;;  %v45_v4 = vld [vmem:[#allocation5] sm:$0xff]  ;;  %s159_s25 = sshll.u32 %s271_s24, 4  ;;  %s160_s25 = int_to_ptr.vmem [resolvable:$true] %s159_s25 }
  0x1e   :  { %186 = vmatpush3.xpose.msk.msra.mxu0 %vm56_vm0, %v48_v0  ;;  %193 = vmatprep.mubr.msk.f32.mxu0 %vm56_vm0, %v43_v2  ;;  %v44_v5 = vld [vmem:[#allocation2 + $0x8] sm:$0xff]  ;;  %v172_v6 = vld [vmem:[%s327_s2] ss:$0 sm:$0xff]  ;;  %s241_s26 = scalar_lea.vmem %s160_s25, 256  ;;  %p246_p11 = scmp.lt.s32.totalorder %s160_s25, %s160_s25 }
  0x1f   :  { %187 = vmatprep.subr.msk.mxu0 %vm56_vm0, %v47_v1  ;;  %p242_p10 = scmp.ne.s32.totalorder %s160_s25, %s241_s26  ;;  %p247_p12 = scmp.lt.s32.totalorder %s241_s26, %s241_s26 }
  0x21   :  { %p248_p13 = por %p247_p12, %p246_p11 }
  0x22   :  { %188 = vmatpush3.xpose.msk.msra.mxu0 %vm56_vm0, %v47_v1 }
  0x23   :  { %189 = vmatprep.subr.msk.mxu0 %vm56_vm0, %v46_v3  ;;  %p249_p0 = pnand %p248_p13, %p242_p10 }
  0x26   :  { %190 = vmatpush3.xpose.msk.msra.mxu0 %vm56_vm0, %v46_v3 }
  0x27   :  { %191 = vmatprep.subr.msk.mxu0 %vm56_vm0, %v45_v4 }
  0x2a   :  { %192 = vmatpush3.xpose.msk.msra.mxu0 %vm56_vm0, %v45_v4 }
  0x2d   :  { %194 = vmatmul.mubr.msk.f32.vlgmr.msra.gmra.mxu0 %vm56_vm0, %v44_v5 }
  0xed   :  { %v195_v7 = vpop.f32.mrf.mxu0 }
  0xee   :  { %v147_v8 = vadd.f32 %v195_v7, %v172_v6 }
  0xef   :  { %v141_v9 = vpop.f32.mrf.mxu0 }
  0xf0   :  { %v151_v10 = vmax.f32 %v147_v8, 0.0  ;;  %v142_v11 = vadd.f32 %v172_v6, %v141_v9 }
  0xf2   :  { %153 = vst.msk [vmem:[#allocation7 + $0x8] sm:$0xff] %vm56_vm0, %v151_v10  ;;  %v150_v12 = vmax.f32 %v142_v11, 0.0 }
  0xf4   :  { %152 = vst.msk [vmem:[#allocation7] sm:$0xff] %vm56_vm0, %v150_v12 }
  0xf5   :  { %252 = shalt.err (!%p249_p0)
}
  0xf6   :  { %165 = dma.vmem_to_hbm [thread:$0]  %s160_s25, 256, %s328_s3, [#allocation4], %s268_s15, %s268_s15, %s269_s16  }
  0xf7   :  { %265 = dma.done.wait [#allocation4], 256  }
  0xf8   :  { %266 = vsyncadd [#allocation4], 4294967040 }
  0xf9   :  { %169 = vsyncpa [#allocation3], 1 }
  0xfa   :  { %170 = vsyncpa [#allocation6], 1 }
  0xfb   :  { %171 = vsyncpa [#allocation4], 1 }

</bundles_post_ra>
